<compile_context>
chip_gen: v6e
topology: v6e:2x2x1
jax: 0.10.0
libtpu: 0.0.40
codegen_flags: <defaults>
</compile_context>

<pallas_src>
import functools

import jax
import jax.numpy as jnp
from jax.experimental import pallas as pl
from jax.experimental.pallas import tpu as pltpu

_LANE = 128


def _round_up(x, m):
    return (x + m - 1) // m * m


def _pick_tile(rows, k, cout_p, *, x_bytes=2, out_bytes=4,
               budget=12 * 1024 * 1024, min_steps=8, max_tile=512):
    """Row tile: fits the double-buffered VMEM budget, multiple of 16 (bf16
    sublane packing), and gives the pipeline >= min_steps grid steps when the
    problem is big enough."""
    per_row = 2 * (k * x_bytes + cout_p * out_bytes)   # 2 = double buffering
    tm = min(max_tile, max(16, budget // per_row), rows)
    if rows // max(tm, 1) < min_steps and rows >= min_steps * 16:
        tm = rows // min_steps
    tm = max(16, (tm // 16) * 16)
    return tm


def _transition_kernel(x_ref, scale_ref, bias_ref, w_ref, o_ref):
    # x_ref:     (TM, 4*Cin_p)    bf16  activations, 2x2-window pixels grouped on lanes
    # scale_ref: (1, 4*Cin_p)     f32   folded BN scale (tiled 4x)
    # bias_ref:  (1, 4*Cin_p)     f32   folded BN bias  (tiled 4x)
    # w_ref:     (Cin_p, Cout_p)  bf16  1x1 conv weight, pre-scaled by 0.25
    # o_ref:     (TM, Cout_p)     f32
    cp = w_ref.shape[0]
    x = x_ref[...].astype(jnp.float32)                           # upcast (v5e-safe)
    h = jnp.maximum(x * scale_ref[...] + bias_ref[...], 0.0)     # BN + ReLU (VPU, f32)
    # Average the 4 pooling-window pixels on the VPU (0.25 folded into weight).
    # Slices are vreg-aligned lane groups since Cin_p % 128 == 0.
    h_avg = (h[:, :cp] + h[:, cp:2 * cp] + h[:, 2 * cp:3 * cp] + h[:, 3 * cp:4 * cp])
    y = jnp.dot(h_avg.astype(jnp.bfloat16), w_ref[...],          # conv + pool (MXU)
                preferred_element_type=jnp.float32)
    o_ref[...] = y.astype(o_ref.dtype)


@functools.partial(jax.jit, static_argnames=("eps",))
def transition_block(x_nchw, gamma, beta, run_mean, run_var, conv_w, eps=1e-5):
    """x_nchw: (N, Cin, H, W) f32. conv_w: (Cout, Cin, 1, 1). Returns NCHW f32."""
    N, Cin, H, W = x_nchw.shape
    Cout = conv_w.shape[0]
    Ho, Wo = H // 2, W // 2
    M = Ho * Wo
    Cin_p = _round_up(Cin, _LANE)
    Cout_p = _round_up(Cout, _LANE)
    K = 4 * Cin_p

    # ---- host-side layout plumbing (bf16 so the repack copies are half-size) ----
    x = x_nchw[:, :, :2 * Ho, :2 * Wo].astype(jnp.bfloat16)      # floor for odd H/W
    x = jnp.transpose(x, (0, 2, 3, 1))                           # (N, H, W, Cin)
    if Cin_p != Cin:
        x = jnp.pad(x, ((0, 0), (0, 0), (0, 0), (0, Cin_p - Cin)))
    # Group each 2x2 pooling window's 4 pixels along the channel (lane) axis,
    # then flatten (N, Ho*Wo) into one row axis.
    x = x.reshape(N, Ho, 2, Wo, 2, Cin_p)
    x = jnp.transpose(x, (0, 1, 3, 2, 4, 5)).reshape(N * M, K)

    rows = N * M
    TM = _pick_tile(rows, K, Cout_p)
    n_steps = -(-rows // TM)                                     # cdiv
    rows_p = n_steps * TM
    if rows_p != rows:
        x = jnp.pad(x, ((0, rows_p - rows), (0, 0)))

    # ---- fold BatchNorm (inference) into a per-channel affine, tiled 4x ----
    scale = gamma / jnp.sqrt(run_var + eps)
    bias = beta - run_mean * scale
    scale_p = jnp.zeros((Cin_p,), jnp.float32).at[:Cin].set(scale)
    bias_p = jnp.zeros((Cin_p,), jnp.float32).at[:Cin].set(bias)
    scale4 = jnp.tile(scale_p, 4).reshape(1, K)
    bias4 = jnp.tile(bias_p, 4).reshape(1, K)

    # ---- conv weight: (Cout,Cin,1,1) -> (Cin_p, Cout_p), pre-scale by 0.25 ----
    w2d = conv_w[:, :, 0, 0].T                                   # (Cin, Cout)
    w_pad = jnp.zeros((Cin_p, Cout_p), jnp.float32).at[:Cin, :Cout].set(w2d)
    w = (w_pad * 0.25).astype(jnp.bfloat16)                      # exact scaling

    out_flat = pl.pallas_call(
        _transition_kernel,
        out_shape=jax.ShapeDtypeStruct((rows_p, Cout_p), jnp.float32),
        grid_spec=pltpu.PrefetchScalarGridSpec(
            num_scalar_prefetch=0,
            grid=(n_steps,),
            in_specs=[
                pl.BlockSpec((TM, K), lambda i: (i, 0)),
                pl.BlockSpec((1, K), lambda i: (0, 0)),
                pl.BlockSpec((1, K), lambda i: (0, 0)),
                pl.BlockSpec((Cin_p, Cout_p), lambda i: (0, 0)),
            ],
            out_specs=pl.BlockSpec((TM, Cout_p), lambda i: (i, 0)),
        ),
        compiler_params=pltpu.CompilerParams(
            dimension_semantics=("parallel",)),
    )(x, scale4, bias4, w)

    # drop row / channel padding -> (N, Ho, Wo, Cout) -> NCHW
    out = out_flat[:rows, :Cout].reshape(N, Ho, Wo, Cout)
    return jnp.transpose(out, (0, 3, 1, 2))


def _reference(x_nchw, gamma, beta, run_mean, run_var, conv_w, eps=1e-5):
    """Pure-JAX f32 reference of the same forward (inference path)."""
    scale = gamma / jnp.sqrt(run_var + eps)
    bias = beta - run_mean * scale
    h = x_nchw * scale[None, :, None, None] + bias[None, :, None, None]
    h = jnp.maximum(h, 0.0)
    y = jnp.einsum("nchw,oc->nohw", h, conv_w[:, :, 0, 0])
    N, Co, H, W = y.shape
    y = y.reshape(N, Co, H // 2, 2, W // 2, 2).mean(axis=(3, 5))
    return y


if __name__ == "__main__":
    key = jax.random.PRNGKey(0)
    N, Cin, H, W = 2, 4, 16, 16
    Cout = 8

    k = jax.random.split(key, 6)
    x = jax.random.normal(k[0], (N, Cin, H, W), dtype=jnp.float32)
    gamma = jax.random.normal(k[1], (Cin,), dtype=jnp.float32) * 0.1 + 1.0
    beta = jax.random.normal(k[2], (Cin,), dtype=jnp.float32) * 0.1
    run_mean = jax.random.normal(k[3], (Cin,), dtype=jnp.float32) * 0.1
    run_var = jax.random.uniform(k[4], (Cin,), dtype=jnp.float32,
                                 minval=0.5, maxval=1.5)
    conv_w = jax.random.normal(k[5], (Cout, Cin, 1, 1), dtype=jnp.float32) * 0.2

    out = transition_block(x, gamma, beta, run_mean, run_var, conv_w)
    out = jax.block_until_ready(out)

    ref = _reference(x, gamma, beta, run_mean, run_var, conv_w)
    assert out.shape == (N, Cout, H // 2, W // 2), out.shape
    # bf16 activations / MXU operands -> loosen tolerance vs. the all-f32 reference.
    assert jnp.allclose(out, ref, atol=3e-2, rtol=3e-2), "mismatch vs reference"

    print("KERNEL_OK")
</pallas_src>

<mosaic_0001>
module attributes {stable_mosaic.version = 11 : i64} {
  func.func @_transition_kernel(%arg0: i32, %arg1: memref<16x512xbf16, #tpu.memory_space<vmem>>, %arg2: memref<1x512xf32, #tpu.memory_space<vmem>>, %arg3: memref<1x512xf32, #tpu.memory_space<vmem>>, %arg4: memref<128x128xbf16, #tpu.memory_space<vmem>>, %arg5: memref<16x128xf32, #tpu.memory_space<vmem>>) attributes {dimension_semantics = [#tpu.dimension_semantics<parallel>], iteration_bounds = array<i64: 8>, scalar_prefetch = 0 : i64, scratch_operands = 0 : i64, tpu.core_type = #tpu.core_type<tc>, window_params = [{transform_indices = @transform_0, window_bounds = array<i64: 16, 512>}, {pipeline_mode = #tpu.pipeline_mode<synchronous>, transform_indices = @transform_1, window_bounds = array<i64: 1, 512>}, {pipeline_mode = #tpu.pipeline_mode<synchronous>, transform_indices = @transform_2, window_bounds = array<i64: 1, 512>}, {pipeline_mode = #tpu.pipeline_mode<synchronous>, transform_indices = @transform_3, window_bounds = array<i64: 128, 128>}, {transform_indices = @transform_4, window_bounds = array<i64: 16, 128>}]} {
    %c0 = arith.constant 0 : index
    %c0_0 = arith.constant 0 : index
    %0 = vector.load %arg1[%c0, %c0_0] : memref<16x512xbf16, #tpu.memory_space<vmem>>, vector<16x512xbf16>
    %1 = arith.extf %0 : vector<16x512xbf16> to vector<16x512xf32>
    %c0_1 = arith.constant 0 : index
    %c0_2 = arith.constant 0 : index
    %2 = vector.load %arg2[%c0_1, %c0_2] : memref<1x512xf32, #tpu.memory_space<vmem>>, vector<1x512xf32>
    %3 = vector.broadcast %2 : vector<1x512xf32> to vector<16x512xf32>
    %4 = arith.mulf %1, %3 : vector<16x512xf32>
    %c0_3 = arith.constant 0 : index
    %c0_4 = arith.constant 0 : index
    %5 = vector.load %arg3[%c0_3, %c0_4] : memref<1x512xf32, #tpu.memory_space<vmem>>, vector<1x512xf32>
    %6 = vector.broadcast %5 : vector<1x512xf32> to vector<16x512xf32>
    %7 = arith.addf %4, %6 : vector<16x512xf32>
    %cst = arith.constant 0.000000e+00 : f32
    %8 = vector.broadcast %cst : f32 to vector<16x512xf32>
    %9 = arith.maximumf %7, %8 : vector<16x512xf32>
    %10 = vector.extract_strided_slice %9 {offsets = [0, 0], sizes = [16, 128], strides = [1, 1]} : vector<16x512xf32> to vector<16x128xf32>
    %11 = vector.extract_strided_slice %9 {offsets = [0, 128], sizes = [16, 128], strides = [1, 1]} : vector<16x512xf32> to vector<16x128xf32>
    %12 = arith.addf %10, %11 : vector<16x128xf32>
    %13 = vector.extract_strided_slice %9 {offsets = [0, 256], sizes = [16, 128], strides = [1, 1]} : vector<16x512xf32> to vector<16x128xf32>
    %14 = arith.addf %12, %13 : vector<16x128xf32>
    %15 = vector.extract_strided_slice %9 {offsets = [0, 384], sizes = [16, 128], strides = [1, 1]} : vector<16x512xf32> to vector<16x128xf32>
    %16 = arith.addf %14, %15 : vector<16x128xf32>
    %17 = arith.truncf %16 : vector<16x128xf32> to vector<16x128xbf16>
    %c0_5 = arith.constant 0 : index
    %c0_6 = arith.constant 0 : index
    %18 = vector.load %arg4[%c0_5, %c0_6] : memref<128x128xbf16, #tpu.memory_space<vmem>>, vector<128x128xbf16>
    %cst_7 = arith.constant dense<0.000000e+00> : vector<16x128xf32>
    %19 = tpu.matmul %17, %18, %cst_7 {dimension_numbers = #tpu.dot_dimension_numbers<[1], [0], [0], [1], [0, 0, 1, 1], [], []>} : vector<16x128xbf16>, vector<128x128xbf16>, vector<16x128xf32> -> vector<16x128xf32>
    %c0_8 = arith.constant 0 : index
    %c0_9 = arith.constant 0 : index
    %20 = vector.load %arg5[%c0_8, %c0_9] : memref<16x128xf32, #tpu.memory_space<vmem>>, vector<16x128xf32>
    tpu.vector_store %arg5[%c0_8, %c0_9], %19 {strides = array<i32>} : memref<16x128xf32, #tpu.memory_space<vmem>>, vector<16x128xf32>,
    return
  }
  func.func @transform_0(%arg0: i32) -> (i32, i32) {
    %c0_i32 = arith.constant 0 : i32
    %c0_i32_0 = arith.constant 0 : i32
    return %arg0, %c0_i32 : i32, i32
  }
  func.func @transform_1(%arg0: i32) -> (i32, i32) {
    %c0_i32 = arith.constant 0 : i32
    %c0_i32_0 = arith.constant 0 : i32
    %c0_i32_1 = arith.constant 0 : i32
    return %c0_i32, %c0_i32_0 : i32, i32
  }
  func.func @transform_2(%arg0: i32) -> (i32, i32) {
    %c0_i32 = arith.constant 0 : i32
    %c0_i32_0 = arith.constant 0 : i32
    %c0_i32_1 = arith.constant 0 : i32
    return %c0_i32, %c0_i32_0 : i32, i32
  }
  func.func @transform_3(%arg0: i32) -> (i32, i32) {
    %c0_i32 = arith.constant 0 : i32
    %c0_i32_0 = arith.constant 0 : i32
    %c0_i32_1 = arith.constant 0 : i32
    return %c0_i32, %c0_i32_0 : i32, i32
  }
  func.func @transform_4(%arg0: i32) -> (i32, i32) {
    %c0_i32 = arith.constant 0 : i32
    %c0_i32_0 = arith.constant 0 : i32
    return %arg0, %c0_i32 : i32, i32
  }
}

</mosaic_0001>

<bundles_post_ra>
// kernel: tile.13
= control target key start
LH: loop header
LB: loop body
LE: loop exit
PB: predicated region body
PF: predicated region fallthrough
CT: control target
= control target key end

     0   :  { %s22_s0 = inlined_call_operand.vmem [shape: f32[128], index: 0, kind: input, shape index: {}]   ;;  %s23_s1 = inlined_call_operand.vmem [shape: f32[4,128], index: 1, kind: output, shape index: {}]  }
   0x1   :  { %v4_v0 = vld [vmem:[%s22_s0] ss:$0 sm:$0xff] }
   0x2   :  { %5 = vst [vmem:[%s23_s1] sm:$0xf] %v4_v0 }

// kernel: transition_block.1
= control target key start
LH: loop header
LB: loop body
LE: loop exit
PB: predicated region body
PF: predicated region fallthrough
CT: control target
= control target key end

     0   :  { %s558_s15 = smov 0   ;;  %s618_s0 = inlined_call_operand.vmem [shape: bf16[128,512], index: 0, kind: input, shape index: {}]   ;;  %s619_s1 = inlined_call_operand.vmem [shape: f32[1,512], index: 1, kind: input, shape index: {}]   ;;  %s620_s2 = inlined_call_operand.vmem [shape: f32[1,512], index: 2, kind: input, shape index: {}]   ;;  %s621_s3 = inlined_call_operand.vmem [shape: bf16[128,128], index: 3, kind: input, shape index: {}]   ;;  %s622_s4 = inlined_call_operand.vmem [shape: f32[128,128], index: 4, kind: output, shape index: {}]  }
   0x1 LB: > { %s455_s16 = sadd.s32 4294967295, %s529_s15   ;;  %p459_p0 = scmp.ge.s32.totalorder %s529_s15, 1  ;;  %s529_s15 = sphi %s558_s15, %s14_s15  }
   0x2   : > { %p164_p1 = scmp.lt.s32.totalorder %s529_s15, 9 }
   0x4   : > { %p165_p2 = pnand %p459_p0, %p164_p1 }
   0x5   : > { %s460_s21 = sshll.u32 (!%p165_p2), %s455_s16, 1 }
   0x6   : > { %168 = sbr.rel (%p165_p2) target bundleno = 243 (0xf3), region = 36  ;;  %p192_p3 = scmp.lt.s32.totalorder (!%p165_p2), %s460_s21, 15 }
   0xb   : > { %v515_v0 = vld [vmem:[%s621_s3 + $0x38] sm:$0xff]   ;;  %v219_v1 = vlaneseq  ;;  %v531_v2 = vmov 0.0   ;;  %v516_v3 = vld [vmem:[%s621_s3 + $0x30] sm:$0xff]   ;;  %vm532_vm0 = vmmov 0   ;;  %s624_s21 = smov (!%p192_p3, %s460_s21), 15  ;;  %v517_v5 = vld [vmem:[%s621_s3 + $0x28] sm:$0xff]  }
   0xc   : > { %485 = vmatprep.subr.bf16.mxu0 %v531_v2  ;;  %501 = vmatprep.mubr.msk.bf16.mxu0 %vm532_vm0, %v531_v2  ;;  %s475_s24 = sshll.u32 %s624_s21, 4  ;;  %v217_v7 = vld [vmem:[%s619_s1] sm:$0xf]  ;;  %v519_v34 = vld [vmem:[%s621_s3 + $0x18] sm:$0xff]   ;;  %v520_v51 = vld [vmem:[%s621_s3 + $0x10] sm:$0xff]   ;;  %s464_s17 = sshll.u32 %s624_s21, 3 }
   0xd   : > { %486 = vmatpush3.bf16.msra.mxu0 %v515_v0  ;;  %v220_v4 = vshrl.u32 %v219_v1, 7  ;;  %s196_s27 = scalar_lea.vmem %s618_s0, %s475_s24  ;;  %v518_v15 = vld [vmem:[%s621_s3 + $0x20] sm:$0xff]   ;;  %v521_v61 = vld [vmem:[%s621_s3 + $0x8] sm:$0xff]   ;;  %s202_s20 = scalar_lea.vmem %s622_s4, %s464_s17 }
   0xe   : > { %487 = vmatprep.subr.bf16.mxu0 %v531_v2  ;;  %v205_v11 = vld [vmem:[%s196_s27] sm:$0xff]  ;;  %v206_v12 = vld [vmem:[%s196_s27 + $0x8] sm:$0xff]  ;;  %v207_v13 = vld [vmem:[%s196_s27 + $0x10] sm:$0xff] }
   0xf   : > { %v221_v6 = vsub.s32 0, %v220_v4  ;;  %v225_v8 = vsub.s32 1, %v220_v4  ;;  %v229_v9 = vsub.s32 2, %v220_v4  ;;  %v233_v10 = vsub.s32 3, %v220_v4  ;;  %v208_v16 = vld [vmem:[%s196_s27 + $0x18] sm:$0xff] }
  0x10   : > { %v209_v17 = vunpack.c.l.bf16 %v205_v11  ;;  %v210_v18 = vunpack.c.h.bf16 %v205_v11  ;;  %v211_v19 = vunpack.c.l.bf16 %v206_v12  ;;  %v212_v20 = vunpack.c.h.bf16 %v206_v12  ;;  %v247_v21 = vld [vmem:[%s620_s2] sm:$0xf] }
  0x11   : > { %488 = vmatpush3.bf16.msra.mxu0 %v516_v3  ;;  %v222_v14 = vrot.slane %v217_v7, %v221_v6  ;;  %v213_v22 = vunpack.c.l.bf16 %v207_v13  ;;  %v214_v23 = vunpack.c.h.bf16 %v207_v13  ;;  %v215_v24 = vunpack.c.l.bf16 %v208_v16  ;;  %v522_v3 = vld [vmem:[%s621_s3] sm:$0xff]  }
  0x12   : > { %489 = vmatprep.subr.bf16.mxu0 %v531_v2  ;;  %v216_v25 = vunpack.c.h.bf16 %v208_v16  ;;  %v226_v26 = vrot.slane %v217_v7, %v225_v8  ;;  %v230_v27 = vrot.slane %v217_v7, %v229_v9  ;;  %v234_v28 = vrot.slane %v217_v7, %v233_v10 }
  0x13   : > { %v239_v29 = vmul.f32 %v222_v14, %v209_v17  ;;  %v243_v30 = vmul.f32 %v222_v14, %v213_v22  ;;  %v252_v31 = vrot.slane %v247_v21, %v221_v6  ;;  %v256_v32 = vrot.slane %v247_v21, %v225_v8 }
  0x14   : > { %v260_v33 = vrot.slane %v247_v21, %v229_v9  ;;  %v240_v35 = vmul.f32 %v226_v26, %v210_v18  ;;  %v241_v36 = vmul.f32 %v230_v27, %v211_v19  ;;  %v242_v37 = vmul.f32 %v234_v28, %v212_v20 }
  0x15   : > { %490 = vmatpush3.bf16.msra.mxu0 %v517_v5  ;;  %v244_v38 = vmul.f32 %v226_v26, %v214_v23  ;;  %v245_v39 = vmul.f32 %v230_v27, %v215_v24  ;;  %v246_v40 = vmul.f32 %v234_v28, %v216_v25  ;;  %v264_v41 = vrot.slane %v247_v21, %v233_v10 }
  0x16   : > { %491 = vmatprep.subr.bf16.mxu0 %v531_v2  ;;  %v269_v42 = vadd.f32 %v252_v31, %v239_v29  ;;  %v270_v43 = vadd.f32 %v256_v32, %v240_v35  ;;  %v271_v44 = vadd.f32 %v260_v33, %v241_v36  ;;  %v273_v45 = vadd.f32 %v252_v31, %v243_v30 }
  0x17   : > { %v274_v46 = vadd.f32 %v256_v32, %v244_v38  ;;  %v272_v47 = vadd.f32 %v264_v41, %v242_v37  ;;  %v275_v48 = vadd.f32 %v260_v33, %v245_v39  ;;  %v276_v49 = vadd.f32 %v264_v41, %v246_v40 }
  0x18   : > { %v277_v50 = vmax.f32 %v269_v42, 0.0  ;;  %v278_v52 = vmax.f32 %v270_v43, 0.0  ;;  %v279_v53 = vmax.f32 %v271_v44, 0.0  ;;  %v281_v54 = vmax.f32 %v273_v45, 0.0 }
  0x19   : > { %492 = vmatpush3.bf16.msra.mxu0 %v518_v15  ;;  %v282_v55 = vmax.f32 %v274_v46, 0.0  ;;  %v283_v56 = vmax.f32 %v275_v48, 0.0  ;;  %v280_v59 = vmax.f32 %v272_v47, 0.0  ;;  %v284_v60 = vmax.f32 %v276_v49, 0.0 }
  0x1a   : > { %493 = vmatprep.subr.bf16.mxu0 %v531_v2  ;;  %v285_v57 = vadd.f32 %v278_v52, %v277_v50 }
  0x1b   : > { %v286_v58 = vadd.f32 %v282_v55, %v281_v54 }
  0x1c   : > { %v287_v62 = vadd.f32 %v285_v57, %v279_v53 }
  0x1d   : > { %494 = vmatpush3.bf16.msra.mxu0 %v519_v34  ;;  %v288_v63 = vadd.f32 %v286_v58, %v283_v56 }
  0x1e   : > { %495 = vmatprep.subr.bf16.mxu0 %v531_v2  ;;  %v289_v0 = vadd.f32 %v287_v62, %v280_v59 }
  0x1f   : > { %v290_v1 = vadd.f32 %v288_v63, %v284_v60 }
  0x21   : > { %496 = vmatpush3.bf16.msra.mxu0 %v520_v51  ;;  %v291_v4 = vpack.c.bf16 %v290_v1, %v289_v0 }
  0x22   : > { %497 = vmatprep.subr.bf16.mxu0 %v531_v2 }
  0x25   : > { %498 = vmatpush3.bf16.msra.mxu0 %v521_v61 }
  0x26   : > { %499 = vmatprep.subr.bf16.mxu0 %v531_v2 }
  0x29   : > { %500 = vmatpush3.bf16.msra.mxu0 %v522_v3 }
  0x2c   : > { %502 = vmatmul.mubr.bf16.vlgmr.msra.gmra.mxu0 %v291_v4 }
  0xec   : > { %v390_v5 = vpop.f32.mrf.mxu0 }
  0xed   : > { %397 = vst [vmem:[%s202_s20] sm:$0xff] %v390_v5 }
  0xee   : > { %v503_v6 = vpop.f32.mrf.mxu0 }
  0xf0   : > { %v393_v7 = vpop.f32.mrf.mxu0 }
  0xf1   : > { %398 = vst [vmem:[%s202_s20 + $0x8] sm:$0xff] %v393_v7 }
  0xf2   : > { %v504_v8 = vpop.f32.mrf.mxu0 }
  0xf3 PF: > { %s14_s15 = sadd.s32 1, %s529_s15  }
  0xf4   : > { %p11_p4 = scmp.ge.s32.totalorder %s14_s15, 10  }
  0xf6   :  { %13 = sbr.rel (!%p11_p4) target bundleno = 1 (0x1), region = 66 }

</bundles_post_ra>
